<compile_context>
chip_gen: v7x
topology: tpu7x:2x2x1
jax: 0.10.0
libtpu: 0.0.40
codegen_flags: <defaults>
</compile_context>

<pallas_src>
import numpy as np
import jax
import jax.numpy as jnp
from jax.experimental import pallas as pl
from jax.experimental.pallas import tpu as pltpu

NEG_SLOPE = 0.01  # nn.LeakyReLU default


def _round_up(a, b):
    return (a + b - 1) // b * b


def _leaky(x):
    return jnp.where(x >= 0, x, NEG_SLOPE * x)


def _make_kernel(cin, cout, tl, l_true, mxu_dt):
    f32 = jnp.float32

    def kernel(x_ref, y3l_ref, y0r_ref, o3l_ref, e0r_ref,
               a1_ref, b1_ref, a2_ref, b2_ref, o_ref):
        # x_ref: (Cin, TL)          a1_ref: (4Cin, Cin)   b1_ref: (Cin, 1)
        # halo refs: (Cin,1)/(Cout,1)  a2_ref: (4Cout, Cin)  b2_ref: (4Cout, 1)
        # o_ref: (4Cout, TL) -- rows are the 4 output phases, phase-major.
        j = pl.program_id(1)

        x = x_ref[...].astype(mxu_dt)                                   # (Cin, TL)

        # ---- layer 1: one dense stacked-tap matmul, shift the results -------------
        #   even1[m] = M1 x[m] + M3 x[m-1] + b1 ;  odd1[m] = M0 x[m+1] + M2 x[m] + b1
        y = jnp.dot(a1_ref[...], x, preferred_element_type=f32)         # (4Cin, TL)
        y0 = y[0 * cin:1 * cin, :]
        y1 = y[1 * cin:2 * cin, :]
        y2 = y[2 * cin:3 * cin, :]
        y3 = y[3 * cin:4 * cin, :]

        prev_y3 = jnp.concatenate([y3l_ref[...], y3[:, :tl - 1]], axis=1)
        next_y0 = jnp.concatenate([y0[:, 1:], y0r_ref[...]], axis=1)

        b1 = b1_ref[...]
        even1 = _leaky(y1 + prev_y3 + b1)                               # h[2m]
        odd1 = _leaky(next_y0 + y2 + b1)                                # h[2m+1]

        # zero the streams beyond the true signal length (exact right-edge behaviour)
        col = j * tl + jax.lax.broadcasted_iota(jnp.int32, (1, tl), 1)
        valid = col < l_true
        even1 = jnp.where(valid, even1, 0.0)
        odd1 = jnp.where(valid, odd1, 0.0)

        # ---- layer 2: two dense stacked-tap matmuls, shift the results ------------
        #   p0 = V1 even1[m]   + V3 odd1[m-1]   p1 = V0 odd1[m] + V2 even1[m]
        #   p2 = V1 odd1[m]    + V3 even1[m]    p3 = V0 even1[m+1] + V2 odd1[m]
        e = jnp.dot(a2_ref[...], even1.astype(mxu_dt), preferred_element_type=f32)
        o = jnp.dot(a2_ref[...], odd1.astype(mxu_dt), preferred_element_type=f32)

        e0 = e[0 * cout:1 * cout, :]
        e1 = e[1 * cout:2 * cout, :]
        e2 = e[2 * cout:3 * cout, :]
        e3 = e[3 * cout:4 * cout, :]
        o0 = o[0 * cout:1 * cout, :]
        o1 = o[1 * cout:2 * cout, :]
        o2 = o[2 * cout:3 * cout, :]
        o3 = o[3 * cout:4 * cout, :]

        prev_o3 = jnp.concatenate([o3l_ref[...], o3[:, :tl - 1]], axis=1)
        next_e0 = jnp.concatenate([e0[:, 1:], e0r_ref[...]], axis=1)

        p = jnp.concatenate([e1 + prev_o3,      # out[4m]
                             o0 + e2,           # out[4m+1]
                             o1 + e3,           # out[4m+2]
                             next_e0 + o2],     # out[4m+3]
                            axis=0) + b2_ref[...]
        o_ref[...] = p.astype(o_ref.dtype)

    return kernel


def audio_decoder(z, w1, b1, w2, b2, *, tile_l=8192, mxu_dtype=jnp.bfloat16):
    """z: (N, Cin, L).  w1: (Cin, Cin, 4), b1: (Cin,), w2: (Cin, Cout, 4), b2: (Cout,)
    (PyTorch ConvTranspose1d layouts).  Returns (N, Cout, 4L) float32."""
    N, Cin, L = z.shape
    Cout = w2.shape[1]
    f32 = jnp.float32

    # Per-tap matrices in channel-major layout (out_col += Mk @ x_col); stack all taps.
    m1 = [w1[:, :, k].T.astype(f32) for k in range(4)]            # (Cin, Cin)
    m2 = [w2[:, :, k].T.astype(f32) for k in range(4)]            # (Cout, Cin)
    a1 = jnp.concatenate(m1, axis=0).astype(mxu_dtype)            # (4Cin, Cin)
    a2 = jnp.concatenate(m2, axis=0).astype(mxu_dtype)            # (4Cout, Cin)
    b1c = b1.astype(f32).reshape(Cin, 1)
    b2c = jnp.tile(b2.astype(f32), 4).reshape(4 * Cout, 1)

    # Lane-aligned spatial tiling.
    TL = max(128, min(int(tile_l), _round_up(L, 128)))
    TL = _round_up(TL, 128)
    L_pad = _round_up(L, TL)
    num_j = L_pad // TL

    x_p = jnp.pad(z, ((0, 0), (0, 0), (0, L_pad - L)))

    # ---- tiny cross-tile halo terms (the +/-1 shifted-in columns), precomputed once ----
    zcol = jnp.zeros((N, Cin, 1), x_p.dtype)
    xm1 = jnp.concatenate([zcol, x_p[:, :, TL - 1:L_pad - 1:TL]], axis=2)   # col j*TL-1
    x0 = x_p[:, :, 0:L_pad:TL]                                              # col j*TL
    xt1 = x_p[:, :, TL - 1:L_pad:TL]                                        # col (j+1)*TL-1
    xp1 = jnp.concatenate([x_p[:, :, TL:L_pad:TL], zcol], axis=2)           # col (j+1)*TL

    def tap(mat, cols):                      # (C, Cin) x (N, Cin, J) -> (N, J, C)
        return jnp.einsum('oc,ncj->njo', mat, cols.astype(f32))

    jj = jnp.arange(num_j)
    gate_l = (jj > 0).astype(f32)[None, :, None]                 # col -1 does not exist
    gate_r = ((jj + 1) * TL < L).astype(f32)[None, :, None]      # beyond true length -> 0
    b1v = b1.astype(f32)[None, None, :]

    y3l = tap(m1[3], xm1)                                              # y3 at col j*TL-1
    y0r = tap(m1[0], xp1)                                              # y0 at col (j+1)*TL
    odd1_l = _leaky(tap(m1[0], x0) + tap(m1[2], xm1) + b1v) * gate_l   # odd1 at col j*TL-1
    even1_r = _leaky(tap(m1[1], xp1) + tap(m1[3], xt1) + b1v) * gate_r  # even1 at (j+1)*TL
    o3l = jnp.einsum('oc,njc->njo', m2[3], odd1_l)                     # O3 at col j*TL-1
    e0r = jnp.einsum('oc,njc->njo', m2[0], even1_r)                    # E0 at col (j+1)*TL

    y3l, y0r = y3l[..., None], y0r[..., None]                          # (N, J, Cin, 1)
    o3l, e0r = o3l[..., None], e0r[..., None]                          # (N, J, Cout, 1)

    kernel = _make_kernel(Cin, Cout, TL, L, mxu_dtype)
    out = pl.pallas_call(
        kernel,
        out_shape=jax.ShapeDtypeStruct((N, 4 * Cout, L_pad), f32),
        grid=(N, num_j),
        in_specs=[
            pl.BlockSpec((None, Cin, TL), lambda n, j: (n, 0, j)),            # x tile
            pl.BlockSpec((None, None, Cin, 1), lambda n, j: (n, j, 0, 0)),    # y3 left halo
            pl.BlockSpec((None, None, Cin, 1), lambda n, j: (n, j, 0, 0)),    # y0 right halo
            pl.BlockSpec((None, None, Cout, 1), lambda n, j: (n, j, 0, 0)),   # O3 left halo
            pl.BlockSpec((None, None, Cout, 1), lambda n, j: (n, j, 0, 0)),   # E0 right halo
            pl.BlockSpec((4 * Cin, Cin), lambda n, j: (0, 0)),                # A1
            pl.BlockSpec((Cin, 1), lambda n, j: (0, 0)),                      # b1
            pl.BlockSpec((4 * Cout, Cin), lambda n, j: (0, 0)),               # A2
            pl.BlockSpec((4 * Cout, 1), lambda n, j: (0, 0)),                 # b2 (stacked)
        ],
        out_specs=pl.BlockSpec((None, 4 * Cout, TL), lambda n, j: (n, 0, j)),
        compiler_params=pltpu.CompilerParams(
            dimension_semantics=("parallel", "parallel"),
            vmem_limit_bytes=32 * 2 ** 20,   # << 64 MiB physical VMEM on v7x
        ),
    )(x_p, y3l, y0r, o3l, e0r, a1, b1c, a2, b2c)

    # TODO(synk): fold this 4-phase lane interleave into the kernel once a supported
    # lane-interleave relayout exists; today it is a single XLA transpose pass.
    y = out.reshape(N, 4, Cout, L_pad)[:, :, :, :L]
    y = jnp.transpose(y, (0, 2, 3, 1))                 # (N, Cout, L, 4)
    return y.reshape(N, Cout, 4 * L)                   # PyTorch NCL


# ----------------------- numpy reference (PyTorch semantics) -----------------------
def _conv_transpose1d_ref(x, w, b, stride=2, padding=1):
    N, Cin, L = x.shape
    _, Cout, K = w.shape
    Lfull = (L - 1) * stride + K
    full = np.zeros((N, Cout, Lfull), dtype=np.float64)
    for s in range(L):
        full[:, :, s * stride: s * stride + K] += np.einsum('ni,iok->nok', x[:, :, s], w)
    return full[:, :, padding: Lfull - padding] + b[None, :, None]


def _reference(z, w1, b1, w2, b2):
    h = _conv_transpose1d_ref(np.asarray(z, np.float64), np.asarray(w1, np.float64),
                              np.asarray(b1, np.float64))
    h = np.where(h >= 0, h, NEG_SLOPE * h)
    return _conv_transpose1d_ref(h, np.asarray(w2, np.float64), np.asarray(b2, np.float64))


if __name__ == "__main__":
    key = jax.random.PRNGKey(0)
    N, Cin, Cout = 2, 8, 4   # scale_factor is stored but unused in forward()
    k1, k2, k3, k4, k5, k6 = jax.random.split(key, 6)
    w1 = 0.2 * jax.random.normal(k2, (Cin, Cin, 4), dtype=jnp.float32)
    b1 = 0.1 * jax.random.normal(k3, (Cin,), dtype=jnp.float32)
    w2 = 0.2 * jax.random.normal(k4, (Cin, Cout, 4), dtype=jnp.float32)
    b2 = 0.1 * jax.random.normal(k5, (Cout,), dtype=jnp.float32)

    # 1) small shapes, default bf16 MXU operands (perf path)
    L = 16
    z = jax.random.normal(k1, (N, Cin, L), dtype=jnp.float32)
    out = jax.block_until_ready(audio_decoder(z, w1, b1, w2, b2))
    ref = _reference(np.asarray(z), np.asarray(w1), np.asarray(b1),
                     np.asarray(w2), np.asarray(b2))
    assert out.shape == (N, Cout, 4 * L), out.shape
    np.testing.assert_allclose(np.asarray(out), ref, rtol=5e-2, atol=5e-2)

    # 2) same shapes, f32 MXU operands -> tighter check of the fused structure
    out32 = jax.block_until_ready(audio_decoder(z, w1, b1, w2, b2, mxu_dtype=jnp.float32))
    np.testing.assert_allclose(np.asarray(out32), ref, rtol=2e-2, atol=2e-2)

    # 3) multi-tile spatial grid (L not a tile multiple) exercises the halo / mask logic
    L3 = 300
    z3 = jax.random.normal(k6, (1, Cin, L3), dtype=jnp.float32)
    out3 = jax.block_until_ready(
        audio_decoder(z3, w1, b1, w2, b2, tile_l=128, mxu_dtype=jnp.float32))
    ref3 = _reference(np.asarray(z3), np.asarray(w1), np.asarray(b1),
                      np.asarray(w2), np.asarray(b2))
    assert out3.shape == (1, Cout, 4 * L3), out3.shape
    np.testing.assert_allclose(np.asarray(out3), ref3, rtol=2e-2, atol=2e-2)

    print("KERNEL_OK")
</pallas_src>

<mosaic_0001>
module attributes {stable_mosaic.version = 11 : i64} {
  func.func @kernel(%arg0: i32, %arg1: i32, %arg2: memref<1x8x128xf32, #tpu.memory_space<vmem>>, %arg3: memref<1x1x8x1xf32, #tpu.memory_space<vmem>>, %arg4: memref<1x1x8x1xf32, #tpu.memory_space<vmem>>, %arg5: memref<1x1x4x1xf32, #tpu.memory_space<vmem>>, %arg6: memref<1x1x4x1xf32, #tpu.memory_space<vmem>>, %arg7: memref<32x8xbf16, #tpu.memory_space<vmem>>, %arg8: memref<8x1xf32, #tpu.memory_space<vmem>>, %arg9: memref<16x8xbf16, #tpu.memory_space<vmem>>, %arg10: memref<16x1xf32, #tpu.memory_space<vmem>>, %arg11: memref<1x16x128xf32, #tpu.memory_space<vmem>>) attributes {dimension_semantics = [#tpu.dimension_semantics<parallel>, #tpu.dimension_semantics<parallel>], iteration_bounds = array<i64: 2, 1>, scalar_prefetch = 0 : i64, scratch_operands = 0 : i64, tpu.core_type = #tpu.core_type<tc>, window_params = [{transform_indices = @transform_0, window_bounds = array<i64: 1, 8, 128>}, {transform_indices = @transform_1, window_bounds = array<i64: 1, 1, 8, 1>}, {transform_indices = @transform_2, window_bounds = array<i64: 1, 1, 8, 1>}, {transform_indices = @transform_3, window_bounds = array<i64: 1, 1, 4, 1>}, {transform_indices = @transform_4, window_bounds = array<i64: 1, 1, 4, 1>}, {pipeline_mode = #tpu.pipeline_mode<synchronous>, transform_indices = @transform_5, window_bounds = array<i64: 32, 8>}, {pipeline_mode = #tpu.pipeline_mode<synchronous>, transform_indices = @transform_6, window_bounds = array<i64: 8, 1>}, {pipeline_mode = #tpu.pipeline_mode<synchronous>, transform_indices = @transform_7, window_bounds = array<i64: 16, 8>}, {pipeline_mode = #tpu.pipeline_mode<synchronous>, transform_indices = @transform_8, window_bounds = array<i64: 16, 1>}, {transform_indices = @transform_9, window_bounds = array<i64: 1, 16, 128>}]} {
    %c0 = arith.constant 0 : index
    %c0_0 = arith.constant 0 : index
    %c0_1 = arith.constant 0 : index
    %0 = vector.load %arg2[%c0, %c0_0, %c0_1] : memref<1x8x128xf32, #tpu.memory_space<vmem>>, vector<1x8x128xf32>
    %1 = vector.shape_cast %0 : vector<1x8x128xf32> to vector<8x128xf32>
    %2 = arith.truncf %1 : vector<8x128xf32> to vector<8x128xbf16>
    %c0_2 = arith.constant 0 : index
    %c0_3 = arith.constant 0 : index
    %3 = vector.load %arg7[%c0_2, %c0_3] : memref<32x8xbf16, #tpu.memory_space<vmem>>, vector<32x8xbf16>
    %cst = arith.constant dense<0.000000e+00> : vector<32x128xf32>
    %4 = tpu.matmul %3, %2, %cst {dimension_numbers = #tpu.dot_dimension_numbers<[1], [0], [0], [1], [0, 0, 1, 1], [], []>} : vector<32x8xbf16>, vector<8x128xbf16>, vector<32x128xf32> -> vector<32x128xf32>
    %5 = vector.extract_strided_slice %4 {offsets = [0, 0], sizes = [8, 128], strides = [1, 1]} : vector<32x128xf32> to vector<8x128xf32>
    %6 = vector.extract_strided_slice %4 {offsets = [8, 0], sizes = [8, 128], strides = [1, 1]} : vector<32x128xf32> to vector<8x128xf32>
    %7 = vector.extract_strided_slice %4 {offsets = [16, 0], sizes = [8, 128], strides = [1, 1]} : vector<32x128xf32> to vector<8x128xf32>
    %8 = vector.extract_strided_slice %4 {offsets = [24, 0], sizes = [8, 128], strides = [1, 1]} : vector<32x128xf32> to vector<8x128xf32>
    %c0_4 = arith.constant 0 : index
    %c0_5 = arith.constant 0 : index
    %c0_6 = arith.constant 0 : index
    %c0_7 = arith.constant 0 : index
    %9 = vector.load %arg3[%c0_4, %c0_5, %c0_6, %c0_7] : memref<1x1x8x1xf32, #tpu.memory_space<vmem>>, vector<1x1x8x1xf32>
    %10 = vector.shape_cast %9 : vector<1x1x8x1xf32> to vector<8x1xf32>
    %11 = vector.extract_strided_slice %8 {offsets = [0, 0], sizes = [8, 127], strides = [1, 1]} : vector<8x128xf32> to vector<8x127xf32>
    %12 = tpu.concatenate %10, %11 in 1 : vector<8x1xf32>, vector<8x127xf32> -> vector<8x128xf32>
    %13 = vector.extract_strided_slice %5 {offsets = [0, 1], sizes = [8, 127], strides = [1, 1]} : vector<8x128xf32> to vector<8x127xf32>
    %c0_8 = arith.constant 0 : index
    %c0_9 = arith.constant 0 : index
    %c0_10 = arith.constant 0 : index
    %c0_11 = arith.constant 0 : index
    %14 = vector.load %arg4[%c0_8, %c0_9, %c0_10, %c0_11] : memref<1x1x8x1xf32, #tpu.memory_space<vmem>>, vector<1x1x8x1xf32>
    %15 = vector.shape_cast %14 : vector<1x1x8x1xf32> to vector<8x1xf32>
    %16 = tpu.concatenate %13, %15 in 1 : vector<8x127xf32>, vector<8x1xf32> -> vector<8x128xf32>
    %c0_12 = arith.constant 0 : index
    %c0_13 = arith.constant 0 : index
    %17 = vector.load %arg8[%c0_12, %c0_13] : memref<8x1xf32, #tpu.memory_space<vmem>>, vector<8x1xf32>
    %18 = arith.addf %6, %12 : vector<8x128xf32>
    %19 = vector.broadcast %17 : vector<8x1xf32> to vector<8x128xf32>
    %20 = arith.addf %18, %19 : vector<8x128xf32>
    %cst_14 = arith.constant 0.000000e+00 : f32
    %21 = vector.broadcast %cst_14 : f32 to vector<8x128xf32>
    %22 = arith.cmpf oge, %20, %21 : vector<8x128xf32>
    %cst_15 = arith.constant 0.00999999977 : f32
    %23 = vector.broadcast %cst_15 : f32 to vector<8x128xf32>
    %24 = arith.mulf %23, %20 : vector<8x128xf32>
    %25 = arith.select %22, %20, %24 : vector<8x128xi1>, vector<8x128xf32>
    %26 = arith.addf %16, %7 : vector<8x128xf32>
    %27 = vector.broadcast %17 : vector<8x1xf32> to vector<8x128xf32>
    %28 = arith.addf %26, %27 : vector<8x128xf32>
    %cst_16 = arith.constant 0.000000e+00 : f32
    %29 = vector.broadcast %cst_16 : f32 to vector<8x128xf32>
    %30 = arith.cmpf oge, %28, %29 : vector<8x128xf32>
    %cst_17 = arith.constant 0.00999999977 : f32
    %31 = vector.broadcast %cst_17 : f32 to vector<8x128xf32>
    %32 = arith.mulf %31, %28 : vector<8x128xf32>
    %33 = arith.select %30, %28, %32 : vector<8x128xi1>, vector<8x128xf32>
    %c128_i32 = arith.constant 128 : i32
    %34 = arith.muli %arg1, %c128_i32 : i32
    %35 = tpu.iota {dimensions = array<i32: 1>} : vector<1x128xi32>
    %36 = vector.broadcast %34 : i32 to vector<1x128xi32>
    %37 = arith.addi %36, %35 : vector<1x128xi32>
    %c16_i32 = arith.constant 16 : i32
    %38 = vector.broadcast %c16_i32 : i32 to vector<1x128xi32>
    %39 = arith.cmpi slt, %37, %38 : vector<1x128xi32>
    %cst_18 = arith.constant 0.000000e+00 : f32
    %40 = vector.shape_cast %39 : vector<1x128xi1> to vector<1x128xi1>
    %41 = vector.broadcast %40 : vector<1x128xi1> to vector<8x128xi1>
    %42 = vector.broadcast %cst_18 : f32 to vector<8x128xf32>
    %43 = arith.select %41, %25, %42 : vector<8x128xi1>, vector<8x128xf32>
    %cst_19 = arith.constant 0.000000e+00 : f32
    %44 = vector.shape_cast %39 : vector<1x128xi1> to vector<1x128xi1>
    %45 = vector.broadcast %44 : vector<1x128xi1> to vector<8x128xi1>
    %46 = vector.broadcast %cst_19 : f32 to vector<8x128xf32>
    %47 = arith.select %45, %33, %46 : vector<8x128xi1>, vector<8x128xf32>
    %c0_20 = arith.constant 0 : index
    %c0_21 = arith.constant 0 : index
    %48 = vector.load %arg9[%c0_20, %c0_21] : memref<16x8xbf16, #tpu.memory_space<vmem>>, vector<16x8xbf16>
    %49 = arith.truncf %43 : vector<8x128xf32> to vector<8x128xbf16>
    %cst_22 = arith.constant dense<0.000000e+00> : vector<16x128xf32>
    %50 = tpu.matmul %48, %49, %cst_22 {dimension_numbers = #tpu.dot_dimension_numbers<[1], [0], [0], [1], [0, 0, 1, 1], [], []>} : vector<16x8xbf16>, vector<8x128xbf16>, vector<16x128xf32> -> vector<16x128xf32>
    %c0_23 = arith.constant 0 : index
    %c0_24 = arith.constant 0 : index
    %51 = vector.load %arg9[%c0_23, %c0_24] : memref<16x8xbf16, #tpu.memory_space<vmem>>, vector<16x8xbf16>
    %52 = arith.truncf %47 : vector<8x128xf32> to vector<8x128xbf16>
    %cst_25 = arith.constant dense<0.000000e+00> : vector<16x128xf32>
    %53 = tpu.matmul %51, %52, %cst_25 {dimension_numbers = #tpu.dot_dimension_numbers<[1], [0], [0], [1], [0, 0, 1, 1], [], []>} : vector<16x8xbf16>, vector<8x128xbf16>, vector<16x128xf32> -> vector<16x128xf32>
    %54 = vector.extract_strided_slice %50 {offsets = [0, 0], sizes = [4, 128], strides = [1, 1]} : vector<16x128xf32> to vector<4x128xf32>
    %55 = vector.extract_strided_slice %50 {offsets = [4, 0], sizes = [4, 128], strides = [1, 1]} : vector<16x128xf32> to vector<4x128xf32>
    %56 = vector.extract_strided_slice %50 {offsets = [8, 0], sizes = [4, 128], strides = [1, 1]} : vector<16x128xf32> to vector<4x128xf32>
    %57 = vector.extract_strided_slice %50 {offsets = [12, 0], sizes = [4, 128], strides = [1, 1]} : vector<16x128xf32> to vector<4x128xf32>
    %58 = vector.extract_strided_slice %53 {offsets = [0, 0], sizes = [4, 128], strides = [1, 1]} : vector<16x128xf32> to vector<4x128xf32>
    %59 = vector.extract_strided_slice %53 {offsets = [4, 0], sizes = [4, 128], strides = [1, 1]} : vector<16x128xf32> to vector<4x128xf32>
    %60 = vector.extract_strided_slice %53 {offsets = [8, 0], sizes = [4, 128], strides = [1, 1]} : vector<16x128xf32> to vector<4x128xf32>
    %61 = vector.extract_strided_slice %53 {offsets = [12, 0], sizes = [4, 128], strides = [1, 1]} : vector<16x128xf32> to vector<4x128xf32>
    %c0_26 = arith.constant 0 : index
    %c0_27 = arith.constant 0 : index
    %c0_28 = arith.constant 0 : index
    %c0_29 = arith.constant 0 : index
    %62 = vector.load %arg5[%c0_26, %c0_27, %c0_28, %c0_29] : memref<1x1x4x1xf32, #tpu.memory_space<vmem>>, vector<1x1x4x1xf32>
    %63 = vector.shape_cast %62 : vector<1x1x4x1xf32> to vector<4x1xf32>
    %64 = vector.extract_strided_slice %61 {offsets = [0, 0], sizes = [4, 127], strides = [1, 1]} : vector<4x128xf32> to vector<4x127xf32>
    %65 = tpu.concatenate %63, %64 in 1 : vector<4x1xf32>, vector<4x127xf32> -> vector<4x128xf32>
    %66 = vector.extract_strided_slice %54 {offsets = [0, 1], sizes = [4, 127], strides = [1, 1]} : vector<4x128xf32> to vector<4x127xf32>
    %c0_30 = arith.constant 0 : index
    %c0_31 = arith.constant 0 : index
    %c0_32 = arith.constant 0 : index
    %c0_33 = arith.constant 0 : index
    %67 = vector.load %arg6[%c0_30, %c0_31, %c0_32, %c0_33] : memref<1x1x4x1xf32, #tpu.memory_space<vmem>>, vector<1x1x4x1xf32>
    %68 = vector.shape_cast %67 : vector<1x1x4x1xf32> to vector<4x1xf32>
    %69 = tpu.concatenate %66, %68 in 1 : vector<4x127xf32>, vector<4x1xf32> -> vector<4x128xf32>
    %70 = arith.addf %55, %65 : vector<4x128xf32>
    %71 = arith.addf %58, %56 : vector<4x128xf32>
    %72 = arith.addf %59, %57 : vector<4x128xf32>
    %73 = arith.addf %69, %60 : vector<4x128xf32>
    %74 = tpu.concatenate %70, %71, %72, %73 in 0 : vector<4x128xf32>, vector<4x128xf32>, vector<4x128xf32>, vector<4x128xf32> -> vector<16x128xf32>
    %c0_34 = arith.constant 0 : index
    %c0_35 = arith.constant 0 : index
    %75 = vector.load %arg10[%c0_34, %c0_35] : memref<16x1xf32, #tpu.memory_space<vmem>>, vector<16x1xf32>
    %76 = vector.broadcast %75 : vector<16x1xf32> to vector<16x128xf32>
    %77 = arith.addf %74, %76 : vector<16x128xf32>
    %c0_36 = arith.constant 0 : index
    %c0_37 = arith.constant 0 : index
    %c0_38 = arith.constant 0 : index
    %78 = vector.load %arg11[%c0_36, %c0_37, %c0_38] : memref<1x16x128xf32, #tpu.memory_space<vmem>>, vector<1x16x128xf32>
    %79 = vector.shape_cast %78 : vector<1x16x128xf32> to vector<16x128xf32>
    %80 = vector.shape_cast %77 : vector<16x128xf32> to vector<1x16x128xf32>
    tpu.vector_store %arg11[%c0_36, %c0_37, %c0_38], %80 {strides = array<i32>} : memref<1x16x128xf32, #tpu.memory_space<vmem>>, vector<1x16x128xf32>,
    return
  }
  func.func @transform_0(%arg0: i32, %arg1: i32) -> (i32, i32, i32) {
    %c0_i32 = arith.constant 0 : i32
    %c0_i32_0 = arith.constant 0 : i32
    return %arg0, %c0_i32, %arg1 : i32, i32, i32
  }
  func.func @transform_1(%arg0: i32, %arg1: i32) -> (i32, i32, i32, i32) {
    %c0_i32 = arith.constant 0 : i32
    %c0_i32_0 = arith.constant 0 : i32
    %c0_i32_1 = arith.constant 0 : i32
    return %arg0, %arg1, %c0_i32, %c0_i32_0 : i32, i32, i32, i32
  }
  func.func @transform_2(%arg0: i32, %arg1: i32) -> (i32, i32, i32, i32) {
    %c0_i32 = arith.constant 0 : i32
    %c0_i32_0 = arith.constant 0 : i32
    %c0_i32_1 = arith.constant 0 : i32
    return %arg0, %arg1, %c0_i32, %c0_i32_0 : i32, i32, i32, i32
  }
  func.func @transform_3(%arg0: i32, %arg1: i32) -> (i32, i32, i32, i32) {
    %c0_i32 = arith.constant 0 : i32
    %c0_i32_0 = arith.constant 0 : i32
    %c0_i32_1 = arith.constant 0 : i32
    return %arg0, %arg1, %c0_i32, %c0_i32_0 : i32, i32, i32, i32
  }
  func.func @transform_4(%arg0: i32, %arg1: i32) -> (i32, i32, i32, i32) {
    %c0_i32 = arith.constant 0 : i32
    %c0_i32_0 = arith.constant 0 : i32
    %c0_i32_1 = arith.constant 0 : i32
    return %arg0, %arg1, %c0_i32, %c0_i32_0 : i32, i32, i32, i32
  }
  func.func @transform_5(%arg0: i32, %arg1: i32) -> (i32, i32) {
    %c0_i32 = arith.constant 0 : i32
    %c0_i32_0 = arith.constant 0 : i32
    %c0_i32_1 = arith.constant 0 : i32
    return %c0_i32, %c0_i32_0 : i32, i32
  }
  func.func @transform_6(%arg0: i32, %arg1: i32) -> (i32, i32) {
    %c0_i32 = arith.constant 0 : i32
    %c0_i32_0 = arith.constant 0 : i32
    %c0_i32_1 = arith.constant 0 : i32
    return %c0_i32, %c0_i32_0 : i32, i32
  }
  func.func @transform_7(%arg0: i32, %arg1: i32) -> (i32, i32) {
    %c0_i32 = arith.constant 0 : i32
    %c0_i32_0 = arith.constant 0 : i32
    %c0_i32_1 = arith.constant 0 : i32
    return %c0_i32, %c0_i32_0 : i32, i32
  }
  func.func @transform_8(%arg0: i32, %arg1: i32) -> (i32, i32) {
    %c0_i32 = arith.constant 0 : i32
    %c0_i32_0 = arith.constant 0 : i32
    %c0_i32_1 = arith.constant 0 : i32
    return %c0_i32, %c0_i32_0 : i32, i32
  }
  func.func @transform_9(%arg0: i32, %arg1: i32) -> (i32, i32, i32) {
    %c0_i32 = arith.constant 0 : i32
    %c0_i32_0 = arith.constant 0 : i32
    return %arg0, %c0_i32, %arg1 : i32, i32, i32
  }
}

</mosaic_0001>

<bundles_post_ra>
// kernel: tpu_custom_call.1
= control target key start
LH: loop header
LB: loop body
LE: loop exit
PB: predicated region body
PF: predicated region fallthrough
CT: control target
= control target key end

     0   :  { %14 = vsyncpa [#allocation3], 0  ;;  %s1315_s0 = inlined_call_operand.vmem [shape: f32[2,8,128], index: 0, kind: input, shape index: {}]   ;;  %s1316_s1 = inlined_call_operand.vmem [shape: f32[2,1,8,1], index: 1, kind: input, shape index: {}]   ;;  %s1317_s2 = inlined_call_operand.vmem [shape: f32[2,1,8,1], index: 2, kind: input, shape index: {}]   ;;  %s1318_s3 = inlined_call_operand.vmem [shape: f32[2,1,4,1], index: 3, kind: input, shape index: {}]   ;;  %s1319_s4 = inlined_call_operand.vmem [shape: f32[2,1,4,1], index: 4, kind: input, shape index: {}]   ;;  %s1320_s5 = inlined_call_operand.vmem [shape: bf16[32,8], index: 5, kind: input, shape index: {}]   ;;  %s1321_s6 = inlined_call_operand.vmem [shape: f32[8,1], index: 6, kind: input, shape index: {}]   ;;  %s1322_s7 = inlined_call_operand.vmem [shape: bf16[16,8], index: 7, kind: input, shape index: {}]   ;;  %s1323_s8 = inlined_call_operand.vmem [shape: f32[16,1], index: 8, kind: input, shape index: {}]   ;;  %s1324_s9 = inlined_call_operand.hbm [shape: f32[2,16,128], index: 9, kind: output, shape index: {}]  }
   0x1   :  { %16 = vsyncpa [#allocation3 + $0x1], 0  ;;  %s1141_s30 = smov 0   ;;  %s1143_s10 = smov 0  }
   0x2   :  { %s1145_s11 = smov 0   ;;  %s1147_s12 = smov 0  }
   0x3   :  { %s1149_s13 = smov 0   ;;  %s1151_s14 = smov 0  }
   0x4 LB: > { %s886_s15 = sadd.s32 4294967295, %s1081_s14   ;;  %s887_s16 = sadd.s32 4294967294, %s1081_s14   ;;  %s1081_s14 = sphi %s1151_s14, %s22_s14   ;;  %s1077_s13 = sphi %s1149_s13, %s1331_s13   ;;  %s1073_s12 = sphi %s1147_s12, %s1330_s12   ;;  %s1069_s11 = sphi %s1145_s11, %s1329_s11   ;;  %s1065_s10 = sphi %s1143_s10, %s1328_s10   ;;  %s1061_s30 = sphi %s1141_s30, %s1327_s30  }
   0x5   : > { %s34_s17 = sadd.s32 1, %s1077_s13  ;;  %s267_s18 = sadd.s32 1, %s1069_s11 }
   0x6   : > { %p36_p0 = scmp.ge.s32.totalorder %s34_s17, 2  ;;  %p277_p1 = scmp.ne.s32.totalorder %s1069_s11, %s1065_s10 }
   0x7   : > { %p278_p2 = scmp.eq.s32.totalorder %s886_s15, 1  ;;  %p283_p3 = scmp.ne.s32.totalorder %s1065_s10, %s1061_s30 }
   0x8   : > { %s1333_s17 = smov (%p36_p0, %s34_s17), 0  ;;  %p284_p5 = scmp.eq.s32.totalorder %s887_s16, 1 }
   0x9   : > { %p1181_p4 = por %p278_p2, %p277_p1  ;;  %s262_s20 = ssub.s32 %s1077_s13, %s1333_s17 }
   0xa   : > { %p890_p6 = scmp.ge.s32.totalorder %s1081_s14, 1  ;;  %p265_p7 = scmp.eq.s32.totalorder %s262_s20, 0 }
   0xb   : > { %p1188_p8 = por %p284_p5, %p283_p3  ;;  %p364_p9 = scmp.lt.s32.totalorder %s1081_s14, 3 }
   0xc   : > { %s1194_s22 = scalar_select %p265_p7, %s1069_s11, %s267_s18  }
   0xd   : > { %p365_p10 = pnand %p890_p6, %p364_p9 }
   0xe   : > { %p430_p11 = scmp.lt.s32.totalorder (!%p365_p10), %s1073_s12, 1  ;;  %v1000_v0 = vld [vmem:[%s1320_s5] sm:$0xff] (!%p365_p10)   ;;  %vm482_vm0 = vcmask (!%p365_p10), 64512   ;;  %v1083_v2 = vmov (!%p365_p10), 0   ;;  %vm489_vm1 = vcmask (!%p365_p10), 1043456   ;;  %s1084_s24 = smov (!%p365_p10), 127   ;;  %v577_v17 = vlaneseq (!%p365_p10) }
   0xf   : > { %368 = sbr.rel (%p365_p10) target bundleno = 734 (0x2de), region = 56  ;;  %v560_v1 = vld [vmem:[%s1321_s6] sm:$0xff] (!%p365_p10)  ;;  %919 = vmatprep.mubr.msk.bf16.mxu0 (!%p365_p10), %vm482_vm0, %v1000_v0  ;;  %998 = vset.pattern.permute.xlu0 (!%p365_p10), %v1083_v2  ;;  %v1001_v7 = vld [vmem:[%s1320_s5 + $0x8] sm:$0xff] (!%p365_p10)   ;;  %v1085_v8 = vmov (!%p365_p10), 0.0   ;;  %s1086_s29 = smov (!%p365_p10), 1   ;;  %vm1087_vm2 = vmmov (!%p365_p10), 0  }
  0x10   : > { %564 = vperm.xlu0 (!%p365_p10), %998, %v560_v1   ;;  %999 = vset.pattern.permute.xlu1 (!%p365_p10), %v1083_v2  ;;  %v721_v13 = vld [vmem:[%s1323_s8 + $0x8] sm:$0xff] (!%p365_p10)  ;;  %v720_v14 = vld [vmem:[%s1323_s8] sm:$0xff] (!%p365_p10)  ;;  %vm558_vm3 = vcmask (!%p365_p10), 1039360   ;;  %vm547_vm4 = vcmask (!%p365_p10), 7168   ;;  %v578_v24 = vand.u32 (!%p365_p10), 127, %v577_v17  ;;  %s1088_s26 = smov (!%p365_p10), [#allocation2]  }
  0x11   : > { %923 = vmatprep.subr.bf16.mxu1 (!%p365_p10), %v1085_v8  ;;  %925 = vmatprep.mubr.msk.bf16.mxu1 (!%p365_p10), %vm1087_vm2, %v1085_v8  ;;  %v1002_v37 = vld [vmem:[%s1322_s7] sm:$0xff] (!%p365_p10)  }
  0x12   : > { %vm581_vm6 = vcmp.lt.s32.totalorder (!%p365_p10), %v578_v24, 16 }
  0x16   : > { %s1201_s25 = scalar_select %p430_p11, %s1073_s12, 1 }
  0x18   : > { %s1208_s28 = sshll.u32 %s1201_s25, 3 }
  0x19   : > { %s436_s16 = scalar_lea.vmem %s1315_s0, %s1208_s28  ;;  %s450_s23 = scalar_lea.vmem %s1317_s2, %s1208_s28 }
  0x1a   : > { %v466_v3 = vld [vmem:[%s436_s16] sm:$0xff]  ;;  %s443_s27 = scalar_lea.vmem %s1316_s1, %s1208_s28  ;;  %s895_s16 = sshll.u32 %s1201_s25, 2 }
  0x1b   : > { %v549_v4 = vld [vmem:[%s450_s23] sm:$0xff]  ;;  %v467_v5 = vpack.c.bf16 %v466_v3, %v466_v3  ;;  %s464_s23 = scalar_lea.vmem %s1319_s4, %s895_s16  ;;  %s427_s28 = sand.u32 1, %s1065_s10  }
  0x1c   : > { %555 = vrot.lane.b32.xlu1 %v549_v4, %s1084_s24  ;;  %v542_v18 = vld [vmem:[%s443_s27] sm:$0xff]  ;;  %s457_s27 = scalar_lea.vmem %s1318_s3, %s895_s16  ;;  %s891_s15 = sshll.u32 %s427_s28, 4 }
  0x1d   : > { %935 = vmatprep.subr.msk.bf16.mxu0 %vm489_vm1, %v467_v5  ;;  %v491_v6 = vsel %vm489_vm1, %v467_v5, 0  ;;  %v693_v49 = vld [vmem:[%s464_s23] sm:$0xf] }
  0x1e   : > { %918 = vmatpush3.bf16.msra.mxu0 %v491_v6  ;;  %v686_v52 = vld [vmem:[%s457_s27] sm:$0xf]  ;;  %s1007_s27 = sshll.u32 %s1088_s26, 4  ;;  %s1008_s27 = int_to_ptr.vmem [resolvable:$false] %s1007_s27 }
  0x1f   : > { %929 = vmatprep.subr.bf16.mxu0 %v1085_v8 }
  0x21   : > { %920 = vmatmul.mubr.msk.bf16.vlgmr.msra.gmra.mrb[0].mxu0 %vm482_vm0, %v1001_v7 }
  0x22   : > { %931 = vmatprep.mubr.msk.bf16.mxu0 %vm1087_vm2, %v1085_v8 }
  0x8e   : > { %v556_v16 = vpop.permute.xlu1 %555 }
  0x8f   : > { %v565_v15 = vpop.permute.xlu0 %564 }
  0xf4   : > { %v921_v9 = vpop.f32.mrb[0].mxu0 }
  0xf5   : > { %v527_v10 = vpop.f32.mrb[1].mxu0 }
  0xf6   : > { %551 = vrot.lane.b32.xlu0 %v527_v10, %s1084_s24  ;;  %v922_v11 = vpop.f32.mrb[2].mxu0 }
  0xf7   : > { %544 = vrot.lane.b32.xlu1 %v922_v11, %s1086_s29  ;;  %v530_v12 = vpop.f32.mrb[3].mxu0 }
  0xfa   : > { %729 = vperm.xlu0 %998, %v721_v13  }
  0xfb   : > { %724 = vperm.xlu1 %999, %v720_v14  }
 0x168   : > { %v552_v19 = vpop.permute.xlu0 %551 }
 0x169   : > { %v559_v20 = vsel %vm558_vm3, %v552_v19, %v556_v16  ;;  %v545_v21 = vpop.permute.xlu1 %544 }
 0x16a   : > { %v571_v22 = vadd.f32 %v921_v9, %v559_v20  ;;  %v548_v23 = vsel %vm547_vm4, %v542_v18, %v545_v21 }
 0x16b   : > { %v561_v25 = vadd.f32 %v548_v23, %v530_v12 }
 0x16c   : > { %v572_v26 = vadd.f32 %v571_v22, %v565_v15 }
 0x16d   : > { %v567_v27 = vadd.f32 %v565_v15, %v561_v25 }
 0x16e   : > { %v574_v28 = vmul.f32 0.01, %v572_v26  ;;  %vm573_vm5 = vcmp.ge.f32.partialorder %v572_v26, 0.0 }
 0x16f   : > { %vm568_vm7 = vcmp.ge.f32.partialorder %v567_v27, 0.0  ;;  %v569_v29 = vmul.f32 0.01, %v567_v27 }
 0x170   : > { %v575_v30 = vsel %vm573_vm5, %v572_v26, %v574_v28 }
 0x171   : > { %v585_v31 = vsel %vm581_vm6, %v575_v30, 0.0  ;;  %v570_v32 = vsel %vm568_vm7, %v567_v27, %v569_v29 }
 0x172   : > { %v641_v33 = vpack.c.bf16 %v585_v31, %v585_v31  ;;  %v584_v34 = vsel %vm581_vm6, %v570_v32, 0.0 }
 0x173   : > { %v588_v35 = vpack.c.bf16 %v584_v34, %v584_v34 }
 0x174   : > { %v643_v36 = vsel %vm489_vm1, %v641_v33, 0 }
 0x175   : > { %930 = vmatpush3.bf16.msra.mxu0 %v643_v36  ;;  %v598_v38 = vsel %vm489_vm1, %v588_v35, 0 }
 0x176   : > { %924 = vmatpush3.bf16.msra.mxu1 %v598_v38 }
 0x178   : > { %932 = vmatmul.mubr.msk.bf16.vlgmr.msra.gmra.mrb[4].mxu0 %vm482_vm0, %v1002_v37 }
 0x179   : > { %926 = vmatmul.mubr.msk.bf16.vlgmr.msra.gmra.mrb[0].mxu1 %vm482_vm0, %v1002_v37  ;;  %v730_v50 = vpop.permute.xlu0 %729 }
 0x17a   : > { %v725_v51 = vpop.permute.xlu1 %724 }
 0x24b   : > { %v679_v39 = vpop.f32.mrb[4].mxu0 }
 0x24c   : > { %v933_v40 = vpop.f32.mrb[5].mxu0  ;;  %v634_v41 = vpop.f32.mrb[0].mxu1 }
 0x24d   : > { %v682_v42 = vpop.f32.mrb[6].mxu0  ;;  %v927_v43 = vpop.f32.mrb[1].mxu1  ;;  %695 = vrot.lane.b32.xlu1 %v634_v41, %s1084_s24 }
 0x24e   : > { %v688_v44 = vrot.slane %v682_v42, 4  ;;  %v637_v45 = vpop.f32.mrb[2].mxu1  ;;  %v934_v46 = vpop.f32.mrb[7].mxu0 }
 0x24f   : > { %v707_v47 = vadd.f32 %v679_v39, %v637_v45  ;;  %v928_v48 = vpop.f32.mrb[3].mxu1 }
 0x250   : > { %689 = vrot.lane.b32.xlu0 %v688_v44, %s1086_s29  ;;  %s429_s29 = scalar_lea.vmem [#allocation2], %s891_s15  ;;  %s1009_s15 = scalar_lea.vmem %s1008_s27, 512 }
 0x251   : > { %v713_v60 = vrot.slane %v707_v47, 4  ;;  %s751_s16 = sshll.u32 %s429_s29, 4  ;;  %s1267_s16 = int_to_ptr.vmem [resolvable:$true] %s751_s16 }
 0x252   : > { %s1003_s25 = scalar_lea.vmem %s1267_s16, 256  ;;  %p1010_p1 = scmp.lt.s32.totalorder %s1267_s16, %s1008_s27 }
 0x253   : > { %p1004_p12 = scmp.ne.s32.totalorder %s1267_s16, %s1003_s25  ;;  %p1011_p2 = scmp.lt.s32.totalorder %s1009_s15, %s1003_s25 }
 0x254   : > { %699 = vrot.lane.b32.xlu0 %v693_v49, %s1084_s24  ;;  %s909_s24 = sshll.u32 %s1073_s12, 8  ;;  %s1269_s12 = scalar_lea.sflag [#allocation3], %s427_s28 }
 0x255   : > { %s1265_s23 = scalar_lea.hbm %s1324_s9, %s909_s24  ;;  %p1005_p13 = pnand %p1004_p12, %p1181_p4 }
 0x256   : > { %p1012_p3 = por %p1011_p2, %p1010_p1 }
 0x257   : > { %p1006_p0 = pneg %p1005_p13 }
 0x259   : > { %p1013_p5 = pnand %p1012_p3, %p1006_p0 }
 0x2bf   : > { %v696_v56 = vpop.permute.xlu1 %695 }
 0x2c2   : > { %v690_v53 = vpop.permute.xlu0 %689 }
 0x2c3   : > { %v692_v54 = vsel %vm547_vm4, %v686_v52, %v690_v53 }
 0x2c4   : > { %v704_v55 = vrot.slane %v692_v54, 4 }
 0x2c6   : > { %v706_v57 = vadd.f32 %v704_v55, %v634_v41  ;;  %v700_v58 = vpop.permute.xlu0 %699 }
 0x2c7   : > { %v702_v59 = vsel %vm558_vm3, %v696_v56, %v700_v58 }
 0x2c8   : > { %v710_v61 = vrot.slane %v706_v57, 4  ;;  %v708_v62 = vadd.f32 %v702_v59, %v682_v42 }
 0x2ca   : > { %v718_v63 = vsel %vm489_vm1, %v710_v61, %v713_v60  ;;  %v716_v0 = vrot.slane %v708_v62, 4 }
 0x2cb   : > { %v732_v1 = vadd.f32 %v725_v51, %v718_v63 }
 0x2cc   : > { %v719_v2 = vsel %vm489_vm1, %v713_v60, %v716_v0 }
 0x2cd   : > { %v733_v3 = vadd.f32 %v730_v50, %v719_v2  ;;  %734 = vst [vmem:[%s429_s29] sm:$0xff] %v732_v1 }
 0x2cf   : > { %735 = vst [vmem:[%s429_s29 + $0x8] sm:$0xff] %v733_v3 }
 0x2d0   : > { %1016 = shalt.err (!%p1013_p5)
}
 0x2d1   : > { %s1017_s28 = scalar_lea.hbm %s1265_s23, 256  ;;  %s1021_s18 = scalar_lea.hbm %s1324_s9, 512 }
 0x2d2   : > { %p1018_p6 = scmp.ne.s32.totalorder %s1265_s23, %s1017_s28  ;;  %p1022_p10 = scmp.lt.u32.totalorder %s1265_s23, %s1324_s9 }
 0x2d3   : > { %p1023_p11 = scmp.lt.u32.totalorder %s1021_s18, %s1017_s28  ;;  %p1025_p13 = scmp.lt.u32.totalorder %s1017_s28, %s1265_s23 }
 0x2d4   : > { %p1019_p7 = pnand %p1018_p6, %p1181_p4 }
 0x2d5   : > { %p1024_p12 = por %p1023_p11, %p1022_p10 }
 0x2d6   : > { %p1020_p9 = pneg %p1019_p7 }
 0x2d7   : > { %p1026_p0 = por %p1025_p13, %p1024_p12 }
 0x2d9   : > { %p1027_p1 = pnand %p1026_p0, %p1020_p9 }
 0x2db   : > { %1030 = shalt.err (!%p1027_p1)
}
 0x2dc   : > { %s1089_s25 = smov 128   ;;  %s1090_s27 = smov 8  }
 0x2dd   : > { %936 = dma.vmem_to_hbm [thread:$0]  (%p1181_p4), %s1267_s16, 256, %s1265_s23, %s1269_s12, %s1089_s25, %s1089_s25, %s1090_s27  }
 0x2de PF: > { %p942_p2 = scmp.ge.s32.totalorder %s1081_s14, 2  ;;  %s766_s15 = sand.u32 1, %s1061_s30  }
 0x2df   : > { %s767_s28 = scalar_lea.sflag [#allocation3], %s766_s15 }
 0x2e0   : > { %p939_p3 = pnand %p942_p2, %p1188_p8 }
 0x2e2   : > { %1056 = dma.done.wait (!%p939_p3), %s767_s28, 256  }
 0x2e3   : > { %1058 = vsyncadd (!%p939_p3), %s767_s28, 4294967040  ;;  %s22_s14 = sadd.s32 1, %s1081_s14   ;;  %s1327_s30 = smov %s1065_s10 }
 0x2e4   : > { %p19_p5 = scmp.ge.s32.totalorder %s22_s14, 4   ;;  %s1328_s10 = smov %s1069_s11 }
 0x2e5   : > { %s1329_s11 = smov %s1194_s22  ;;  %s1330_s12 = smov %s1077_s13 }
 0x2e6   : > { %s1331_s13 = smov %s1333_s17  ;;  %21 = sbr.rel (!%p19_p5) target bundleno = 4 (0x4), region = 103 }
 0x2ed   :  { %772 = vsyncpa [#allocation3], 1 }
 0x2ee   :  { %774 = vsyncpa [#allocation3 + $0x1], 1 }

</bundles_post_ra>
